<compile_context>
chip_gen: v5e
topology: v5e:2x2
jax: 0.10.0
libtpu: 0.0.40
codegen_flags: <defaults>
</compile_context>

<pallas_src>
import math

import numpy as np
import jax
import jax.numpy as jnp
from jax.experimental import pallas as pl
from jax.experimental.pallas import tpu as pltpu


def _gaussian_1d_taps(size: int, sigma: float) -> np.ndarray:
    """kornia-style normalized 1D gaussian taps."""
    x = np.arange(size, dtype=np.float64) - (size - 1) / 2.0
    g = np.exp(-(x ** 2) / (2.0 * sigma ** 2))
    return g / g.sum()


def _reflect_band_matrix(n: int, taps: np.ndarray, r: int) -> np.ndarray:
    """(n, n) right-multiply blur matrix with 'reflect' padding folded in.

    out[..., o] = sum_in x[..., in] * M[in, o]   (matches jnp.pad(mode='reflect')
    followed by a taps correlation, i.e. kornia GaussianBlur2d border 'reflect').
    """
    assert n > r, "reflect padding requires spatial dim > kernel radius"
    m = np.zeros((n, n), np.float64)
    for o in range(n):
        for j, t in enumerate(taps):
            p = o - r + j
            if p < 0:
                p = -p
            elif p >= n:
                p = 2 * (n - 1) - p
            m[p, o] += t
    return m


def _pick_planes_per_step(P: int, H: int, W: int) -> int:
    """Largest divisor of P that fills the MXU M dim but keeps blocks modest."""
    best = 1
    for pb in range(1, P + 1):
        if P % pb == 0 and pb * H <= 512 and pb * H * W * 4 <= (2 << 20):
            best = pb
    return best


def _make_kernel(inv_npix: float):
    """Fused kernel: MXU separable blur (reflect folded into taps) + MSE partials."""

    def kernel(intf_ref, den_ref, th_ref, tw_ref, out_ref, acc_ref):
        s = pl.program_id(1)

        # Zero the plane-shaped accumulator at the start of each reduction sweep.
        @pl.when(s == 0)
        def _init():
            acc_ref[...] = jnp.zeros_like(acc_ref)

        pb, h, w = den_ref.shape

        # Interface planes: merged (Pb*H, W) bf16 operand for the W (lane) pass.
        x = intf_ref[...].reshape(pb * h, w).astype(jnp.bfloat16)
        den = den_ref[...].astype(jnp.float32)

        # W (lane) pass for all Pb planes at once on the MXU: (Pb*H, W) @ (W, W).
        xw = jnp.dot(x, tw_ref[...], preferred_element_type=jnp.float32)
        xw = xw.astype(jnp.bfloat16).reshape(pb, h, w)

        # H (sublane) pass + squared error, static unroll over the Pb planes:
        #   smooth_p = Th @ xw_p   (H, H) @ (H, W)  on the MXU.
        partial = None
        for p in range(pb):
            smooth = jnp.dot(th_ref[...], xw[p], preferred_element_type=jnp.float32)
            d = den[p] - smooth
            sq = d * d
            partial = sq if partial is None else partial + sq

        # Plane-shaped VPU accumulation (no per-step cross-lane reduce).
        acc_ref[...] += partial

        # Finalize: one cross-lane reduce + global 1/N scale per output block.
        @pl.when(s == pl.num_programs(1) - 1)
        def _fin():
            total = jnp.sum(acc_ref[...]) * inv_npix
            out_ref[...] = total.reshape(1, 1, 1)

    return kernel


def interface_map_loss(denoised, target, target_interfaces, *,
                       interface_gauss_sigma: float = 1.0):
    """JAX/Pallas equivalent of InterfaceMapLoss.forward with data_loss = MSE."""
    del target  # unused by the reference forward()
    assert denoised.shape == target_interfaces.shape
    N, C, H, W = denoised.shape

    ksize = int(math.floor(interface_gauss_sigma * 3.0)) * 2 + 1
    r = ksize // 2
    assert H > r and W > r, "reflect padding needs H, W > kernel radius"
    taps = _gaussian_1d_taps(ksize, interface_gauss_sigma)

    P = N * C
    intf = target_interfaces.reshape(P, H, W)   # raw planes, no padding pass in HBM
    den = denoised.reshape(P, H, W)             # keep input dtype; upcast in VMEM

    # Square band matrices with reflect padding folded in (bf16 for native MXU rate):
    #   Tw (W, W): right factor, blurs along W (lane axis)
    #   Th (H, H): left factor,  blurs along H (sublane axis)
    tw = jnp.asarray(_reflect_band_matrix(W, taps, r), dtype=jnp.bfloat16)
    th = jnp.asarray(_reflect_band_matrix(H, taps, r).T, dtype=jnp.bfloat16)

    # Plane batching per grid step + optional 2-way parallel split (v7x dual-TC).
    Pb = _pick_planes_per_step(P, H, W)
    n_groups = P // Pb
    G = 2 if n_groups % 2 == 0 else 1
    S = n_groups // G

    # Explicit scoped-VMEM budget sized to the real working set.
    itembytes = (jnp.dtype(intf.dtype).itemsize + jnp.dtype(den.dtype).itemsize)
    vmem_est = (2 * Pb * H * W * itembytes        # double-buffered plane blocks
                + 2 * 2 * (H * H + W * W)         # double-buffered bf16 tap matrices
                + H * W * 4                       # accumulator scratch
                + 6 * Pb * H * W * 4              # in-body f32/bf16 temporaries
                + (2 << 20))                      # slack
    vmem_limit = int(min(64 << 20, max(32 << 20, vmem_est)))

    inv_npix = 1.0 / float(P * H * W)
    kernel = _make_kernel(inv_npix)

    out = pl.pallas_call(
        kernel,
        out_shape=jax.ShapeDtypeStruct((G, 1, 1), jnp.float32),
        grid=(G, S),
        in_specs=[
            pl.BlockSpec((Pb, H, W), lambda g, s: (g * S + s, 0, 0)),  # interfaces
            pl.BlockSpec((Pb, H, W), lambda g, s: (g * S + s, 0, 0)),  # denoised
            pl.BlockSpec((H, H), lambda g, s: (0, 0)),                 # Th (resident)
            pl.BlockSpec((W, W), lambda g, s: (0, 0)),                 # Tw (resident)
        ],
        # Per-parallel-slice partial sum; resident across the reduction axis.
        out_specs=pl.BlockSpec((1, 1, 1), lambda g, s: (g, 0, 0)),
        scratch_shapes=[pltpu.VMEM((H, W), jnp.float32)],
        compiler_params=pltpu.CompilerParams(
            dimension_semantics=("parallel", "arbitrary"),
            vmem_limit_bytes=vmem_limit),
    )(intf, den, th, tw)

    # Sum the (1 or 2) per-slice partials; each is already scaled by 1/(N*C*H*W).
    return jnp.sum(out)


def _reference_loss(denoised, target, target_interfaces, *,
                    interface_gauss_sigma: float = 1.0):
    """Pure-jnp reference (reflect pad + tap-loop blur) for validation."""
    del target
    ksize = int(math.floor(interface_gauss_sigma * 3.0)) * 2 + 1
    r = ksize // 2
    taps = _gaussian_1d_taps(ksize, interface_gauss_sigma)
    H, W = denoised.shape[-2:]
    xp = jnp.pad(target_interfaces.astype(jnp.float32),
                 ((0, 0), (0, 0), (r, r), (r, r)), mode="reflect")
    tmp = sum(float(taps[j]) * xp[:, :, :, j:j + W] for j in range(ksize))
    smooth = sum(float(taps[i]) * tmp[:, :, i:i + H, :] for i in range(ksize))
    return jnp.mean((denoised.astype(jnp.float32) - smooth) ** 2)


if __name__ == "__main__":
    root = jax.random.PRNGKey(0)

    def run_case(case_key, shape):
        k1, k2, k3 = jax.random.split(case_key, 3)
        denoised = jax.random.normal(k1, shape, dtype=jnp.float32)
        target = jax.random.normal(k2, shape, dtype=jnp.float32)
        # interfaces: sparse-ish non-negative indicator map
        target_interfaces = jnp.maximum(
            jax.random.normal(k3, shape, dtype=jnp.float32), 0.0)

        loss = jax.block_until_ready(
            interface_map_loss(denoised, target, target_interfaces,
                               interface_gauss_sigma=1.0))
        ref = jax.block_until_ready(
            _reference_loss(denoised, target, target_interfaces,
                            interface_gauss_sigma=1.0))

        assert np.isfinite(float(loss)), "kernel produced non-finite loss"
        # Tolerance covers bf16 operands on the MXU blur path vs. the f32 tap-loop ref.
        np.testing.assert_allclose(float(loss), float(ref), rtol=7e-3, atol=1e-4)

    k_a, k_b = jax.random.split(root)
    run_case(k_a, (2, 4, 16, 16))     # primary shape from the module spec
    run_case(k_b, (4, 6, 128, 128))   # exercises multi-step grid + parallel axis

    print("KERNEL_OK")
</pallas_src>

<mosaic_0001>
module attributes {stable_mosaic.version = 11 : i64} {
  func.func @kernel(%arg0: i32, %arg1: i32, %arg2: memref<8x16x16xf32, #tpu.memory_space<vmem>>, %arg3: memref<8x16x16xf32, #tpu.memory_space<vmem>>, %arg4: memref<16x16xbf16, #tpu.memory_space<vmem>>, %arg5: memref<16x16xbf16, #tpu.memory_space<vmem>>, %arg6: memref<1x1x1xf32, #tpu.memory_space<vmem>>, %arg7: memref<16x16xf32, #tpu.memory_space<vmem>>) attributes {dimension_semantics = [#tpu.dimension_semantics<parallel>, #tpu.dimension_semantics<arbitrary>], iteration_bounds = array<i64: 1, 1>, scalar_prefetch = 0 : i64, scratch_operands = 1 : i64, tpu.core_type = #tpu.core_type<tc>, window_params = [{transform_indices = @transform_0, window_bounds = array<i64: 8, 16, 16>}, {transform_indices = @transform_1, window_bounds = array<i64: 8, 16, 16>}, {pipeline_mode = #tpu.pipeline_mode<synchronous>, transform_indices = @transform_2, window_bounds = array<i64: 16, 16>}, {pipeline_mode = #tpu.pipeline_mode<synchronous>, transform_indices = @transform_3, window_bounds = array<i64: 16, 16>}, {transform_indices = @transform_4, window_bounds = array<i64: 1, 1, 1>}]} {
    %c0_i32 = arith.constant 0 : i32
    %0 = arith.cmpi eq, %arg1, %c0_i32 : i32
    %1 = arith.extui %0 : i1 to i32
    %c0_i32_0 = arith.constant 0 : i32
    %2 = arith.cmpi ne, %1, %c0_i32_0 : i32
    scf.if %2 {
      %cst_38 = arith.constant 0.000000e+00 : f32
      %88 = vector.broadcast %cst_38 : f32 to vector<16x16xf32>
      %c0_39 = arith.constant 0 : index
      %c0_40 = arith.constant 0 : index
      %89 = vector.load %arg7[%c0_39, %c0_40] : memref<16x16xf32, #tpu.memory_space<vmem>>, vector<16x16xf32>
      tpu.vector_store %arg7[%c0_39, %c0_40], %88 {strides = array<i32>} : memref<16x16xf32, #tpu.memory_space<vmem>>, vector<16x16xf32>,
    } else {
    }
    %c0 = arith.constant 0 : index
    %c0_1 = arith.constant 0 : index
    %c0_2 = arith.constant 0 : index
    %3 = vector.load %arg2[%c0, %c0_1, %c0_2] : memref<8x16x16xf32, #tpu.memory_space<vmem>>, vector<8x16x16xf32>
    %4 = vector.shape_cast %3 : vector<8x16x16xf32> to vector<128x16xf32>
    %5 = arith.truncf %4 : vector<128x16xf32> to vector<128x16xbf16>
    %c0_3 = arith.constant 0 : index
    %c0_4 = arith.constant 0 : index
    %c0_5 = arith.constant 0 : index
    %6 = vector.load %arg3[%c0_3, %c0_4, %c0_5] : memref<8x16x16xf32, #tpu.memory_space<vmem>>, vector<8x16x16xf32>
    %c0_6 = arith.constant 0 : index
    %c0_7 = arith.constant 0 : index
    %7 = vector.load %arg5[%c0_6, %c0_7] : memref<16x16xbf16, #tpu.memory_space<vmem>>, vector<16x16xbf16>
    %cst = arith.constant dense<0.000000e+00> : vector<128x16xf32>
    %8 = tpu.matmul %5, %7, %cst {dimension_numbers = #tpu.dot_dimension_numbers<[1], [0], [0], [1], [0, 0, 1, 1], [], []>} : vector<128x16xbf16>, vector<16x16xbf16>, vector<128x16xf32> -> vector<128x16xf32>
    %9 = arith.truncf %8 : vector<128x16xf32> to vector<128x16xbf16>
    %10 = vector.shape_cast %9 : vector<128x16xbf16> to vector<8x16x16xbf16>
    %c0_8 = arith.constant 0 : index
    %c0_9 = arith.constant 0 : index
    %11 = vector.load %arg4[%c0_8, %c0_9] : memref<16x16xbf16, #tpu.memory_space<vmem>>, vector<16x16xbf16>
    %12 = vector.extract_strided_slice %10 {offsets = [0, 0, 0], sizes = [1, 16, 16], strides = [1, 1, 1]} : vector<8x16x16xbf16> to vector<1x16x16xbf16>
    %13 = vector.shape_cast %12 : vector<1x16x16xbf16> to vector<16x16xbf16>
    %cst_10 = arith.constant dense<0.000000e+00> : vector<16x16xf32>
    %14 = tpu.matmul %11, %13, %cst_10 {dimension_numbers = #tpu.dot_dimension_numbers<[1], [0], [0], [1], [0, 0, 1, 1], [], []>} : vector<16x16xbf16>, vector<16x16xbf16>, vector<16x16xf32> -> vector<16x16xf32>
    %15 = vector.extract_strided_slice %6 {offsets = [0, 0, 0], sizes = [1, 16, 16], strides = [1, 1, 1]} : vector<8x16x16xf32> to vector<1x16x16xf32>
    %16 = vector.shape_cast %15 : vector<1x16x16xf32> to vector<16x16xf32>
    %17 = arith.subf %16, %14 : vector<16x16xf32>
    %18 = arith.mulf %17, %17 : vector<16x16xf32>
    %c0_11 = arith.constant 0 : index
    %c0_12 = arith.constant 0 : index
    %19 = vector.load %arg4[%c0_11, %c0_12] : memref<16x16xbf16, #tpu.memory_space<vmem>>, vector<16x16xbf16>
    %20 = vector.extract_strided_slice %10 {offsets = [1, 0, 0], sizes = [1, 16, 16], strides = [1, 1, 1]} : vector<8x16x16xbf16> to vector<1x16x16xbf16>
    %21 = vector.shape_cast %20 : vector<1x16x16xbf16> to vector<16x16xbf16>
    %cst_13 = arith.constant dense<0.000000e+00> : vector<16x16xf32>
    %22 = tpu.matmul %19, %21, %cst_13 {dimension_numbers = #tpu.dot_dimension_numbers<[1], [0], [0], [1], [0, 0, 1, 1], [], []>} : vector<16x16xbf16>, vector<16x16xbf16>, vector<16x16xf32> -> vector<16x16xf32>
    %23 = vector.extract_strided_slice %6 {offsets = [1, 0, 0], sizes = [1, 16, 16], strides = [1, 1, 1]} : vector<8x16x16xf32> to vector<1x16x16xf32>
    %24 = vector.shape_cast %23 : vector<1x16x16xf32> to vector<16x16xf32>
    %25 = arith.subf %24, %22 : vector<16x16xf32>
    %26 = arith.mulf %25, %25 : vector<16x16xf32>
    %27 = arith.addf %18, %26 : vector<16x16xf32>
    %c0_14 = arith.constant 0 : index
    %c0_15 = arith.constant 0 : index
    %28 = vector.load %arg4[%c0_14, %c0_15] : memref<16x16xbf16, #tpu.memory_space<vmem>>, vector<16x16xbf16>
    %29 = vector.extract_strided_slice %10 {offsets = [2, 0, 0], sizes = [1, 16, 16], strides = [1, 1, 1]} : vector<8x16x16xbf16> to vector<1x16x16xbf16>
    %30 = vector.shape_cast %29 : vector<1x16x16xbf16> to vector<16x16xbf16>
    %cst_16 = arith.constant dense<0.000000e+00> : vector<16x16xf32>
    %31 = tpu.matmul %28, %30, %cst_16 {dimension_numbers = #tpu.dot_dimension_numbers<[1], [0], [0], [1], [0, 0, 1, 1], [], []>} : vector<16x16xbf16>, vector<16x16xbf16>, vector<16x16xf32> -> vector<16x16xf32>
    %32 = vector.extract_strided_slice %6 {offsets = [2, 0, 0], sizes = [1, 16, 16], strides = [1, 1, 1]} : vector<8x16x16xf32> to vector<1x16x16xf32>
    %33 = vector.shape_cast %32 : vector<1x16x16xf32> to vector<16x16xf32>
    %34 = arith.subf %33, %31 : vector<16x16xf32>
    %35 = arith.mulf %34, %34 : vector<16x16xf32>
    %36 = arith.addf %27, %35 : vector<16x16xf32>
    %c0_17 = arith.constant 0 : index
    %c0_18 = arith.constant 0 : index
    %37 = vector.load %arg4[%c0_17, %c0_18] : memref<16x16xbf16, #tpu.memory_space<vmem>>, vector<16x16xbf16>
    %38 = vector.extract_strided_slice %10 {offsets = [3, 0, 0], sizes = [1, 16, 16], strides = [1, 1, 1]} : vector<8x16x16xbf16> to vector<1x16x16xbf16>
    %39 = vector.shape_cast %38 : vector<1x16x16xbf16> to vector<16x16xbf16>
    %cst_19 = arith.constant dense<0.000000e+00> : vector<16x16xf32>
    %40 = tpu.matmul %37, %39, %cst_19 {dimension_numbers = #tpu.dot_dimension_numbers<[1], [0], [0], [1], [0, 0, 1, 1], [], []>} : vector<16x16xbf16>, vector<16x16xbf16>, vector<16x16xf32> -> vector<16x16xf32>
    %41 = vector.extract_strided_slice %6 {offsets = [3, 0, 0], sizes = [1, 16, 16], strides = [1, 1, 1]} : vector<8x16x16xf32> to vector<1x16x16xf32>
    %42 = vector.shape_cast %41 : vector<1x16x16xf32> to vector<16x16xf32>
    %43 = arith.subf %42, %40 : vector<16x16xf32>
    %44 = arith.mulf %43, %43 : vector<16x16xf32>
    %45 = arith.addf %36, %44 : vector<16x16xf32>
    %c0_20 = arith.constant 0 : index
    %c0_21 = arith.constant 0 : index
    %46 = vector.load %arg4[%c0_20, %c0_21] : memref<16x16xbf16, #tpu.memory_space<vmem>>, vector<16x16xbf16>
    %47 = vector.extract_strided_slice %10 {offsets = [4, 0, 0], sizes = [1, 16, 16], strides = [1, 1, 1]} : vector<8x16x16xbf16> to vector<1x16x16xbf16>
    %48 = vector.shape_cast %47 : vector<1x16x16xbf16> to vector<16x16xbf16>
    %cst_22 = arith.constant dense<0.000000e+00> : vector<16x16xf32>
    %49 = tpu.matmul %46, %48, %cst_22 {dimension_numbers = #tpu.dot_dimension_numbers<[1], [0], [0], [1], [0, 0, 1, 1], [], []>} : vector<16x16xbf16>, vector<16x16xbf16>, vector<16x16xf32> -> vector<16x16xf32>
    %50 = vector.extract_strided_slice %6 {offsets = [4, 0, 0], sizes = [1, 16, 16], strides = [1, 1, 1]} : vector<8x16x16xf32> to vector<1x16x16xf32>
    %51 = vector.shape_cast %50 : vector<1x16x16xf32> to vector<16x16xf32>
    %52 = arith.subf %51, %49 : vector<16x16xf32>
    %53 = arith.mulf %52, %52 : vector<16x16xf32>
    %54 = arith.addf %45, %53 : vector<16x16xf32>
    %c0_23 = arith.constant 0 : index
    %c0_24 = arith.constant 0 : index
    %55 = vector.load %arg4[%c0_23, %c0_24] : memref<16x16xbf16, #tpu.memory_space<vmem>>, vector<16x16xbf16>
    %56 = vector.extract_strided_slice %10 {offsets = [5, 0, 0], sizes = [1, 16, 16], strides = [1, 1, 1]} : vector<8x16x16xbf16> to vector<1x16x16xbf16>
    %57 = vector.shape_cast %56 : vector<1x16x16xbf16> to vector<16x16xbf16>
    %cst_25 = arith.constant dense<0.000000e+00> : vector<16x16xf32>
    %58 = tpu.matmul %55, %57, %cst_25 {dimension_numbers = #tpu.dot_dimension_numbers<[1], [0], [0], [1], [0, 0, 1, 1], [], []>} : vector<16x16xbf16>, vector<16x16xbf16>, vector<16x16xf32> -> vector<16x16xf32>
    %59 = vector.extract_strided_slice %6 {offsets = [5, 0, 0], sizes = [1, 16, 16], strides = [1, 1, 1]} : vector<8x16x16xf32> to vector<1x16x16xf32>
    %60 = vector.shape_cast %59 : vector<1x16x16xf32> to vector<16x16xf32>
    %61 = arith.subf %60, %58 : vector<16x16xf32>
    %62 = arith.mulf %61, %61 : vector<16x16xf32>
    %63 = arith.addf %54, %62 : vector<16x16xf32>
    %c0_26 = arith.constant 0 : index
    %c0_27 = arith.constant 0 : index
    %64 = vector.load %arg4[%c0_26, %c0_27] : memref<16x16xbf16, #tpu.memory_space<vmem>>, vector<16x16xbf16>
    %65 = vector.extract_strided_slice %10 {offsets = [6, 0, 0], sizes = [1, 16, 16], strides = [1, 1, 1]} : vector<8x16x16xbf16> to vector<1x16x16xbf16>
    %66 = vector.shape_cast %65 : vector<1x16x16xbf16> to vector<16x16xbf16>
    %cst_28 = arith.constant dense<0.000000e+00> : vector<16x16xf32>
    %67 = tpu.matmul %64, %66, %cst_28 {dimension_numbers = #tpu.dot_dimension_numbers<[1], [0], [0], [1], [0, 0, 1, 1], [], []>} : vector<16x16xbf16>, vector<16x16xbf16>, vector<16x16xf32> -> vector<16x16xf32>
    %68 = vector.extract_strided_slice %6 {offsets = [6, 0, 0], sizes = [1, 16, 16], strides = [1, 1, 1]} : vector<8x16x16xf32> to vector<1x16x16xf32>
    %69 = vector.shape_cast %68 : vector<1x16x16xf32> to vector<16x16xf32>
    %70 = arith.subf %69, %67 : vector<16x16xf32>
    %71 = arith.mulf %70, %70 : vector<16x16xf32>
    %72 = arith.addf %63, %71 : vector<16x16xf32>
    %c0_29 = arith.constant 0 : index
    %c0_30 = arith.constant 0 : index
    %73 = vector.load %arg4[%c0_29, %c0_30] : memref<16x16xbf16, #tpu.memory_space<vmem>>, vector<16x16xbf16>
    %74 = vector.extract_strided_slice %10 {offsets = [7, 0, 0], sizes = [1, 16, 16], strides = [1, 1, 1]} : vector<8x16x16xbf16> to vector<1x16x16xbf16>
    %75 = vector.shape_cast %74 : vector<1x16x16xbf16> to vector<16x16xbf16>
    %cst_31 = arith.constant dense<0.000000e+00> : vector<16x16xf32>
    %76 = tpu.matmul %73, %75, %cst_31 {dimension_numbers = #tpu.dot_dimension_numbers<[1], [0], [0], [1], [0, 0, 1, 1], [], []>} : vector<16x16xbf16>, vector<16x16xbf16>, vector<16x16xf32> -> vector<16x16xf32>
    %77 = vector.extract_strided_slice %6 {offsets = [7, 0, 0], sizes = [1, 16, 16], strides = [1, 1, 1]} : vector<8x16x16xf32> to vector<1x16x16xf32>
    %78 = vector.shape_cast %77 : vector<1x16x16xf32> to vector<16x16xf32>
    %79 = arith.subf %78, %76 : vector<16x16xf32>
    %80 = arith.mulf %79, %79 : vector<16x16xf32>
    %81 = arith.addf %72, %80 : vector<16x16xf32>
    %c0_32 = arith.constant 0 : index
    %c0_33 = arith.constant 0 : index
    %82 = vector.load %arg7[%c0_32, %c0_33] : memref<16x16xf32, #tpu.memory_space<vmem>>, vector<16x16xf32>
    %83 = arith.addf %82, %81 : vector<16x16xf32>
    %c0_34 = arith.constant 0 : index
    %c0_35 = arith.constant 0 : index
    %84 = vector.load %arg7[%c0_34, %c0_35] : memref<16x16xf32, #tpu.memory_space<vmem>>, vector<16x16xf32>
    tpu.vector_store %arg7[%c0_34, %c0_35], %83 {strides = array<i32>} : memref<16x16xf32, #tpu.memory_space<vmem>>, vector<16x16xf32>,
    %c0_i32_36 = arith.constant 0 : i32
    %85 = arith.cmpi eq, %arg1, %c0_i32_36 : i32
    %86 = arith.extui %85 : i1 to i32
    %c0_i32_37 = arith.constant 0 : i32
    %87 = arith.cmpi ne, %86, %c0_i32_37 : i32
    scf.if %87 {
      %c0_38 = arith.constant 0 : index
      %c0_39 = arith.constant 0 : index
      %88 = vector.load %arg7[%c0_38, %c0_39] : memref<16x16xf32, #tpu.memory_space<vmem>>, vector<16x16xf32>
      %89 = vector.shape_cast %88 : vector<16x16xf32> to vector<1x16x16xf32>
      %cst_40 = arith.constant dense<0.000000e+00> : vector<1xf32>
      %90 = vector.multi_reduction <add>, %89, %cst_40 [1, 2] : vector<1x16x16xf32> to vector<1xf32>
      %91 = vector.shape_cast %90 : vector<1xf32> to vector<1x1x1xf32>
      %92 = vector.extract %91[0, 0, 0] : f32 from vector<1x1x1xf32>
      %cst_41 = arith.constant 4.8828125E-4 : f32
      %93 = arith.mulf %92, %cst_41 : f32
      %94 = vector.broadcast %93 : f32 to vector<1x1x1xf32>
      %c0_42 = arith.constant 0 : index
      %c0_43 = arith.constant 0 : index
      %c0_44 = arith.constant 0 : index
      %95 = vector.load %arg6[%c0_42, %c0_43, %c0_44] : memref<1x1x1xf32, #tpu.memory_space<vmem>>, vector<1x1x1xf32>
      tpu.vector_store %arg6[%c0_42, %c0_43, %c0_44], %94 {strides = array<i32>} : memref<1x1x1xf32, #tpu.memory_space<vmem>>, vector<1x1x1xf32>,
    } else {
    }
    return
  }
  func.func @transform_0(%arg0: i32, %arg1: i32) -> (i32, i32, i32) {
    %c1_i32 = arith.constant 1 : i32
    %0 = arith.muli %arg0, %c1_i32 : i32
    %1 = arith.addi %0, %arg1 : i32
    %c0_i32 = arith.constant 0 : i32
    %c0_i32_0 = arith.constant 0 : i32
    %c0_i32_1 = arith.constant 0 : i32
    return %1, %c0_i32, %c0_i32_0 : i32, i32, i32
  }
  func.func @transform_1(%arg0: i32, %arg1: i32) -> (i32, i32, i32) {
    %c1_i32 = arith.constant 1 : i32
    %0 = arith.muli %arg0, %c1_i32 : i32
    %1 = arith.addi %0, %arg1 : i32
    %c0_i32 = arith.constant 0 : i32
    %c0_i32_0 = arith.constant 0 : i32
    %c0_i32_1 = arith.constant 0 : i32
    return %1, %c0_i32, %c0_i32_0 : i32, i32, i32
  }
  func.func @transform_2(%arg0: i32, %arg1: i32) -> (i32, i32) {
    %c0_i32 = arith.constant 0 : i32
    %c0_i32_0 = arith.constant 0 : i32
    %c0_i32_1 = arith.constant 0 : i32
    return %c0_i32, %c0_i32_0 : i32, i32
  }
  func.func @transform_3(%arg0: i32, %arg1: i32) -> (i32, i32) {
    %c0_i32 = arith.constant 0 : i32
    %c0_i32_0 = arith.constant 0 : i32
    %c0_i32_1 = arith.constant 0 : i32
    return %c0_i32, %c0_i32_0 : i32, i32
  }
  func.func @transform_4(%arg0: i32, %arg1: i32) -> (i32, i32, i32) {
    %c0_i32 = arith.constant 0 : i32
    %c0_i32_0 = arith.constant 0 : i32
    %c0_i32_1 = arith.constant 0 : i32
    return %arg0, %c0_i32, %c0_i32_0 : i32, i32, i32
  }
}

</mosaic_0001>

<bundles_post_ra>
// kernel: tpu_custom_call.1
= control target key start
LH: loop header
LB: loop body
LE: loop exit
PB: predicated region body
PF: predicated region fallthrough
CT: control target
= control target key end

     0   :  { %9 = vsyncpa [#allocation4], 0  ;;  %s744_s0 = inlined_call_operand.hbm [shape: f32[8,16,16], index: 0, kind: input, shape index: {}]   ;;  %s745_s1 = inlined_call_operand.hbm [shape: f32[8,16,16], index: 1, kind: input, shape index: {}]   ;;  %s746_s2 = inlined_call_operand.hbm [shape: bf16[16,16], index: 2, kind: input, shape index: {}]   ;;  %s747_s3 = inlined_call_operand.hbm [shape: bf16[16,16], index: 3, kind: input, shape index: {}]   ;;  %s748_s4 = inlined_call_operand.hbm [shape: f32[1,1,1], index: 4, kind: output, shape index: {}]  }
   0x1   :  { %10 = vsyncpa [#allocation7], 0 }
   0x2   :  { %11 = vsyncpa [#allocation10], 0 }
   0x3   :  { %12 = vsyncpa [#allocation5], 0  ;;  %s40_s17 = sshll.u32 %s745_s1, 4  ;;  %s672_s18 = smov [#allocation6]   ;;  %s41_s17 = int_to_ptr.hbm [resolvable:$true] %s40_s17 }
   0x4   :  { %s42_s19 = sshll.u32 %s672_s18, 4  ;;  %s22_s22 = sshll.u32 %s744_s0, 4  ;;  %s43_s19 = int_to_ptr.vmem [resolvable:$true] %s42_s19  ;;  %s23_s22 = int_to_ptr.hbm [resolvable:$true] %s22_s22 }
   0x5   :  { %s673_s23 = smov 128   ;;  %s674_s24 = smov 8  }
   0x6   :  { %48 = dma.hbm_to_vmem [thread:$0]  %s41_s17, 2048, %s43_s19, [#allocation7], %s673_s23, %s673_s23, %s674_s24  }
   0x7   :  { %s675_s25 = smov [#allocation3]   ;;  %s53_s29 = sshll.u32 %s746_s2, 4  ;;  %s54_s29 = int_to_ptr.hbm [resolvable:$true] %s53_s29 }
   0x8   :  { %s24_s26 = sshll.u32 %s675_s25, 4  ;;  %s676_s1 = smov [#allocation8]   ;;  %s25_s26 = int_to_ptr.vmem [resolvable:$true] %s24_s26 }
   0x9   :  { %30 = dma.hbm_to_vmem [thread:$0]  %s23_s22, 2048, %s25_s26, [#allocation4], %s673_s23, %s673_s23, %s674_s24  }
   0xa   :  { %s55_s30 = sshll.u32 %s676_s1, 4  ;;  %s66_s0 = sshll.u32 %s747_s3, 4  ;;  %s56_s30 = int_to_ptr.vmem [resolvable:$true] %s55_s30  ;;  %s67_s0 = int_to_ptr.hbm [resolvable:$true] %s66_s0 }
   0xb   :  { %s677_s7 = smov 64   ;;  %s678_s8 = smov 4  }
   0xc   :  { %61 = dma.hbm_to_vmem [thread:$0]  %s54_s29, 128, %s56_s30, [#allocation7], %s677_s7, %s677_s7, %s678_s8  }
   0xd   :  { %s679_s9 = smov [#allocation9]  }
   0xe   :  { %s68_s10 = sshll.u32 %s679_s9, 4  ;;  %s69_s10 = int_to_ptr.vmem [resolvable:$true] %s68_s10 }
   0xf   :  { %74 = dma.hbm_to_vmem [thread:$0]  %s67_s0, 128, %s69_s10, [#allocation10], %s677_s7, %s677_s7, %s678_s8  }
  0x10   :  { %664 = dma.done.wait [#allocation4], 2048  }
  0x11   :  { %665 = vsyncadd [#allocation4], 4294965248 }
  0x12   :  { %666 = dma.done.wait [#allocation7], 2176  }
  0x13   :  { %667 = vsyncadd [#allocation7], 4294965120 }
  0x14   :  { %668 = dma.done.wait [#allocation10], 128  }
  0x15   :  { %669 = vsyncadd [#allocation10], 4294967168  ;;  %v527_v0 = vld [vmem:[#allocation9] sm:$0xff]  ;;  %v103_v1 = vld [vmem:[#allocation3] sm:$0xff]  ;;  %vm100_vm0 = vcmask 130048   ;;  %s681_s2 = smov [#allocation11]  }
  0x16   :  { %v104_v2 = vld [vmem:[#allocation3 + $0x8] sm:$0xff]  ;;  %183 = vmatpush.bf16.msra.mxu0 %v527_v0  ;;  %531 = vmatpush.bf16.msra.mxu3 %v527_v0  ;;  %v115_v4 = vld [vmem:[#allocation3 + $0x60] sm:$0xff]  ;;  %v113_v7 = vld [vmem:[#allocation3 + $0x50] sm:$0xff]  ;;  %s489_s3 = sshll.u32 %s681_s2, 4  ;;  %s491_s13 = sshll.u32 %s748_s4, 4  ;;  %vm482_vm1 = vcmask 0   ;;  %s490_s3 = int_to_ptr.vmem [resolvable:$true] %s489_s3  ;;  %s492_s13 = int_to_ptr.hbm [resolvable:$true] %s491_s13 }
  0x17   :  { %v119_v3 = vpack.c.bf16 %v104_v2, %v103_v1  ;;  %v116_v5 = vld [vmem:[#allocation3 + $0x68] sm:$0xff]  ;;  %530 = vmatpush.bf16.msra.mxu2 %v527_v0  ;;  %529 = vmatpush.bf16.msra.mxu1 %v527_v0  ;;  %v114_v8 = vld [vmem:[#allocation3 + $0x58] sm:$0xff]  ;;  %v111_v9 = vld [vmem:[#allocation3 + $0x40] sm:$0xff] }
  0x18   :  { %v125_v6 = vpack.c.bf16 %v116_v5, %v115_v4  ;;  %v124_v10 = vpack.c.bf16 %v114_v8, %v113_v7  ;;  %v112_v11 = vld [vmem:[#allocation3 + $0x48] sm:$0xff]  ;;  %v105_v13 = vld [vmem:[#allocation3 + $0x10] sm:$0xff]  ;;  %v106_v14 = vld [vmem:[#allocation3 + $0x18] sm:$0xff] }
  0x19   :  { %507 = vmatmul.msk.bf16.vlgmr.msra.gmra.mxu0 %vm100_vm0, %v119_v3  ;;  %v123_v12 = vpack.c.bf16 %v112_v11, %v111_v9  ;;  %v117_v15 = vld [vmem:[#allocation3 + $0x70] sm:$0xff]  ;;  %v118_v16 = vld [vmem:[#allocation3 + $0x78] sm:$0xff]  ;;  %v120_v17 = vpack.c.bf16 %v106_v14, %v105_v13  ;;  %v107_v19 = vld [vmem:[#allocation3 + $0x20] sm:$0xff] }
  0x1a   :  { %513 = vmatmul.msk.bf16.vlgmr.msra.gmra.mxu3 %vm100_vm0, %v125_v6  ;;  %512 = vmatmul.msk.bf16.vlgmr.msra.gmra.mxu2 %vm100_vm0, %v124_v10  ;;  %v126_v18 = vpack.c.bf16 %v118_v16, %v117_v15  ;;  %v108_v20 = vld [vmem:[#allocation3 + $0x28] sm:$0xff]  ;;  %v109_v22 = vld [vmem:[#allocation3 + $0x30] sm:$0xff]  ;;  %v110_v23 = vld [vmem:[#allocation3 + $0x38] sm:$0xff] }
  0x1b   :  { %511 = vmatmul.msk.bf16.vlgmr.msra.gmra.mxu1 %vm100_vm0, %v123_v12  ;;  %v121_v21 = vpack.c.bf16 %v108_v20, %v107_v19  ;;  %v122_v24 = vpack.c.bf16 %v110_v23, %v109_v22  ;;  %v528_v36 = vld [vmem:[#allocation8] sm:$0xff] }
  0x29   :  { %508 = vmatmul.msk.bf16.gmra.mxu0 %vm100_vm0, %v120_v17 }
  0x2a   :  { %514 = vmatmul.msk.bf16.gmra.mxu3 %vm100_vm0, %v126_v18 }
  0x39   :  { %509 = vmatmul.msk.bf16.gmra.mxu0 %vm100_vm0, %v121_v21  ;;  %v680_v21 = vmov 0.0  }
  0x3a   :  { %101 = vst.msk [vmem:[#allocation2] sm:$0xff] %vm100_vm0, %v680_v21 }
  0x3b   :  { %102 = vst.msk [vmem:[#allocation2 + $0x8] sm:$0xff] %vm100_vm0, %v680_v21 }
  0x49   :  { %510 = vmatmul.msk.bf16.gmra.mxu0 %vm100_vm0, %v122_v24 }
  0x96   :  { %v185_v25 = vpop.f32.mrf.mxu0 }
  0x97   :  { %v225_v27 = vpack.c.bf16 %v185_v25, %v185_v25  ;;  %v127_v25 = vld [vmem:[#allocation6] sm:$0xff] }
  0x98   :  { %v205_v28 = vpop.f32.mrf.mxu1 }
  0x99   :  { %v250_v31 = vunpack.c.l.b16 %v225_v27  ;;  %v233_v38 = vpack.c.bf16 %v205_v28, %v205_v28  ;;  %v131_v28 = vld [vmem:[#allocation6 + $0x20] sm:$0xff] }
  0x9b   :  { %v355_v44 = vunpack.c.l.b16 %v233_v38  ;;  %v130_v38 = vld [vmem:[#allocation6 + $0x18] sm:$0xff] }
  0x9d   :  { %v215_v26 = vpop.f32.mrf.mxu3  ;;  %v210_v42 = vpop.f32.mrf.mxu2 }
  0x9e   :  { %v187_v29 = vpop.f32.mrf.mxu0  ;;  %v235_v59 = vpack.c.bf16 %v210_v42, %v210_v42  ;;  %v237_v7 = vpack.c.bf16 %v215_v26, %v215_v26  ;;  %v129_v26 = vld [vmem:[#allocation6 + $0x10] sm:$0xff] }
  0x9f   :  { %v226_v30 = vpack.c.bf16 %v187_v29, %v187_v29 }
  0xa0   :  { %v207_v37 = vpop.f32.mrf.mxu1  ;;  %v381_v63 = vunpack.c.l.b16 %v235_v59  ;;  %v407_v12 = vunpack.c.l.b16 %v237_v7 }
  0xa1   :  { %v251_v32 = vunpack.c.l.b16 %v226_v30  ;;  %v234_v39 = vpack.c.bf16 %v207_v37, %v207_v37  ;;  %v128_v37 = vld [vmem:[#allocation6 + $0x8] sm:$0xff] }
  0xa3   :  { %v252_v33 = vpack.c.b16 %v251_v32, %v250_v31  ;;  %v356_v45 = vunpack.c.l.b16 %v234_v39  ;;  %v133_v32 = vld [vmem:[#allocation6 + $0x30] sm:$0xff] }
  0xa5   :  { %v217_v34 = vpop.f32.mrf.mxu3  ;;  %264 = vmatpush.bf16.msrb.mxu1 %v252_v33  ;;  %v357_v49 = vpack.c.b16 %v356_v45, %v355_v44  ;;  %v212_v56 = vpop.f32.mrf.mxu2 }
  0xa6   :  { %v190_v35 = vpop.f32.mrf.mxu0  ;;  %v236_v60 = vpack.c.bf16 %v212_v56, %v212_v56  ;;  %v238_v8 = vpack.c.bf16 %v217_v34, %v217_v34 }
  0xa7   :  { %v227_v41 = vpack.c.bf16 %v190_v35, %v190_v35 }
  0xa8   :  { %519 = vmatmul.msk.bf16.vlgmr.msrb.gmra.mxu1 %vm100_vm0, %v528_v36  ;;  %v382_v0 = vunpack.c.l.b16 %v236_v60  ;;  %v408_v13 = vunpack.c.l.b16 %v238_v8 }
  0xa9   :  { %v277_v47 = vunpack.c.l.b16 %v227_v41 }
  0xaa   :  { %v383_v4 = vpack.c.b16 %v382_v0, %v381_v63  ;;  %v409_v17 = vpack.c.b16 %v408_v13, %v407_v12  ;;  %v139_v63 = vld [vmem:[#allocation6 + $0x60] sm:$0xff] }
  0xad   :  { %v220_v40 = vpop.f32.mrf.mxu3 }
  0xae   :  { %v192_v43 = vpop.f32.mrf.mxu0  ;;  %v239_v51 = vpack.c.bf16 %v220_v40, %v220_v40  ;;  %v135_v40 = vld [vmem:[#allocation6 + $0x40] sm:$0xff] }
  0xaf   :  { %v228_v46 = vpack.c.bf16 %v192_v43, %v192_v43  ;;  %v132_v43 = vld [vmem:[#allocation6 + $0x28] sm:$0xff] }
  0xb0   :  { %v433_v53 = vunpack.c.l.b16 %v239_v51 }
  0xb1   :  { %v278_v48 = vunpack.c.l.b16 %v228_v46  ;;  %v137_v46 = vld [vmem:[#allocation6 + $0x50] sm:$0xff] }
  0xb3   :  { %v279_v50 = vpack.c.b16 %v278_v48, %v277_v47 }
  0xb5   :  { %v222_v52 = vpop.f32.mrf.mxu3  ;;  %288 = vmatpush.bf16.msrb.mxu2 %v279_v50 }
  0xb6   :  { %v240_v54 = vpack.c.bf16 %v222_v52, %v222_v52  ;;  %v195_v55 = vpop.f32.mrf.mxu0  ;;  %v134_v52 = vld [vmem:[#allocation6 + $0x38] sm:$0xff] }
  0xb7   :  { %v229_v61 = vpack.c.bf16 %v195_v55, %v195_v55 }
  0xb8   :  { %v434_v57 = vunpack.c.l.b16 %v240_v54  ;;  %520 = vmatmul.msk.bf16.vlgmr.msrb.gmra.mxu2 %vm100_vm0, %v528_v36 }
  0xb9   :  { %366 = vmatpush.bf16.msra.mxu2 %v357_v49  ;;  %v303_v2 = vunpack.c.l.b16 %v229_v61 }
  0xba   :  { %v435_v58 = vpack.c.b16 %v434_v57, %v433_v53  ;;  %v141_v57 = vld [vmem:[#allocation6 + $0x70] sm:$0xff] }
  0xbd   :  { %444 = vmatpush.bf16.msrb.mxu2 %v435_v58 }
  0xbe   :  { %v197_v62 = vpop.f32.mrf.mxu0 }
  0xbf   :  { %v230_v1 = vpack.c.bf16 %v197_v62, %v197_v62 }
  0xc1   :  { %v304_v3 = vunpack.c.l.b16 %v230_v1  ;;  %v136_v1 = vld [vmem:[#allocation6 + $0x48] sm:$0xff] }
  0xc3   :  { %v305_v5 = vpack.c.b16 %v304_v3, %v303_v2 }
  0xc5   :  { %314 = vmatpush.bf16.msrb.mxu3 %v305_v5 }
  0xc6   :  { %v200_v6 = vpop.f32.mrf.mxu0 }
  0xc7   :  { %v231_v9 = vpack.c.bf16 %v200_v6, %v200_v6 }
  0xc8   :  { %521 = vmatmul.msk.bf16.vlgmr.msrb.gmra.mxu3 %vm100_vm0, %v528_v36  ;;  %523 = vmatmul.msk.bf16.vlgmr.msra.gmra.mxu2 %vm100_vm0, %v528_v36 }
  0xc9   :  { %392 = vmatpush.bf16.msra.mxu3 %v383_v4  ;;  %v329_v14 = vunpack.c.l.b16 %v231_v9  ;;  %v138_v4 = vld [vmem:[#allocation6 + $0x58] sm:$0xff] }
  0xce   :  { %v202_v10 = vpop.f32.mrf.mxu0 }
  0xcf   :  { %v232_v11 = vpack.c.bf16 %v202_v10, %v202_v10 }
  0xd1   :  { %v330_v15 = vunpack.c.l.b16 %v232_v11 }
  0xd3   :  { %v331_v16 = vpack.c.b16 %v330_v15, %v329_v14 }
  0xd5   :  { %340 = vmatpush.bf16.msra.mxu1 %v331_v16 }
  0xd8   :  { %522 = vmatmul.msk.bf16.vlgmr.msra.gmra.mxu1 %vm100_vm0, %v528_v36  ;;  %524 = vmatmul.msk.bf16.vlgmr.msra.gmra.mxu3 %vm100_vm0, %v528_v36 }
  0xd9   :  { %418 = vmatpush.bf16.msrb.mxu1 %v409_v17  ;;  %526 = vmatmul.msk.bf16.vlgmr.msrb.gmra.mxu2 %vm100_vm0, %v528_v36 }
  0xe8   :  { %525 = vmatmul.msk.bf16.vlgmr.msrb.gmra.mxu1 %vm100_vm0, %v528_v36 }
 0x125   :  { %v266_v19 = vpop.f32.mrf.mxu1 }
 0x126   :  { %v271_v30 = vsub.f32 %v127_v25, %v266_v19  ;;  %v140_v19 = vld [vmem:[#allocation6 + $0x68] sm:$0xff] }
 0x128   :  { %v273_v35 = vmul.f32 %v271_v30, %v271_v30 }
 0x12d   :  { %v268_v23 = vpop.f32.mrf.mxu1 }
 0x12e   :  { %v272_v44 = vsub.f32 %v128_v37, %v268_v23 }
 0x130   :  { %v274_v55 = vmul.f32 %v272_v44, %v272_v44 }
 0x13b   :  { %v290_v18 = vpop.f32.mrf.mxu2 }
 0x13c   :  { %v295_v31 = vsub.f32 %v129_v26, %v290_v18  ;;  %v457_v18 = vld [vmem:[#allocation2] sm:$0xff] }
 0x13e   :  { %v297_v36 = vmul.f32 %v295_v31, %v295_v31 }
 0x140   :  { %v299_v48 = vadd.f32 %v297_v36, %v273_v35 }
 0x143   :  { %v292_v20 = vpop.f32.mrf.mxu2 }
 0x144   :  { %v296_v45 = vsub.f32 %v130_v38, %v292_v20  ;;  %v142_v20 = vld [vmem:[#allocation6 + $0x78] sm:$0xff] }
 0x146   :  { %v298_v56 = vmul.f32 %v296_v45, %v296_v45 }
 0x148   :  { %v300_v3 = vadd.f32 %v298_v56, %v274_v55 }
 0x14b   :  { %v316_v22 = vpop.f32.mrf.mxu3  ;;  %v368_v24 = vpop.f32.mrf.mxu2 }
 0x14c   :  { %v321_v34 = vsub.f32 %v131_v28, %v316_v22  ;;  %v373_v50 = vsub.f32 %v135_v40, %v368_v24 }
 0x14e   :  { %v323_v42 = vmul.f32 %v321_v34, %v321_v34  ;;  %v375_v60 = vmul.f32 %v373_v50, %v373_v50  ;;  %v458_v34 = vld [vmem:[#allocation2 + $0x8] sm:$0xff] }
 0x150   :  { %v325_v53 = vadd.f32 %v323_v42, %v299_v48 }
 0x153   :  { %v318_v27 = vpop.f32.mrf.mxu3  ;;  %v370_v33 = vpop.f32.mrf.mxu2 }
 0x154   :  { %v322_v51 = vsub.f32 %v132_v43, %v318_v27  ;;  %v374_v11 = vsub.f32 %v136_v1, %v370_v33 }
 0x155   :  { %v342_v29 = vpop.f32.mrf.mxu1 }
 0x156   :  { %v347_v39 = vsub.f32 %v133_v32, %v342_v29  ;;  %v324_v62 = vmul.f32 %v322_v51, %v322_v51  ;;  %v376_v22 = vmul.f32 %v374_v11, %v374_v11 }
 0x158   :  { %v349_v49 = vmul.f32 %v347_v39, %v347_v39  ;;  %v326_v10 = vadd.f32 %v324_v62, %v300_v3 }
 0x15a   :  { %v351_v59 = vadd.f32 %v349_v49, %v325_v53 }
 0x15b   :  { %v394_v41 = vpop.f32.mrf.mxu3 }
 0x15c   :  { %v399_v54 = vsub.f32 %v137_v46, %v394_v41  ;;  %v446_v58 = vpop.f32.mrf.mxu2  ;;  %v377_v7 = vadd.f32 %v375_v60, %v351_v59 }
 0x15d   :  { %v344_v47 = vpop.f32.mrf.mxu1  ;;  %v451_v2 = vsub.f32 %v141_v57, %v446_v58 }
 0x15e   :  { %v348_v61 = vsub.f32 %v134_v52, %v344_v47  ;;  %v401_v0 = vmul.f32 %v399_v54, %v399_v54 }
 0x15f   :  { %v453_v15 = vmul.f32 %v451_v2, %v451_v2 }
 0x160   :  { %v350_v8 = vmul.f32 %v348_v61, %v348_v61  ;;  %v403_v12 = vadd.f32 %v401_v0, %v377_v7 }
 0x162   :  { %v352_v16 = vadd.f32 %v350_v8, %v326_v10 }
 0x163   :  { %v396_v5 = vpop.f32.mrf.mxu3 }
 0x164   :  { %v400_v13 = vsub.f32 %v138_v4, %v396_v5  ;;  %v448_v21 = vpop.f32.mrf.mxu2  ;;  %v378_v26 = vadd.f32 %v376_v22, %v352_v16 }
 0x165   :  { %v420_v6 = vpop.f32.mrf.mxu1  ;;  %v452_v29 = vsub.f32 %v142_v20, %v448_v21 }
 0x166   :  { %v425_v9 = vsub.f32 %v139_v63, %v420_v6  ;;  %v402_v23 = vmul.f32 %v400_v13, %v400_v13 }
 0x167   :  { %v454_v33 = vmul.f32 %v452_v29, %v452_v29 }
 0x168   :  { %v427_v14 = vmul.f32 %v425_v9, %v425_v9  ;;  %v404_v30 = vadd.f32 %v402_v23, %v378_v26 }
 0x16a   :  { %v429_v17 = vadd.f32 %v427_v14, %v403_v12 }
 0x16c   :  { %v455_v24 = vadd.f32 %v453_v15, %v429_v17 }
 0x16d   :  { %v422_v25 = vpop.f32.mrf.mxu1 }
 0x16e   :  { %v459_v27 = vadd.f32 %v457_v18, %v455_v24  ;;  %v426_v28 = vsub.f32 %v140_v19, %v422_v25 }
 0x170   :  { %461 = vst.msk [vmem:[#allocation2] sm:$0xff] %vm100_vm0, %v459_v27  ;;  %v428_v31 = vmul.f32 %v426_v28, %v426_v28 }
 0x172   :  { %v430_v32 = vadd.f32 %v428_v31, %v404_v30 }
 0x174   :  { %v456_v35 = vadd.f32 %v454_v33, %v430_v32 }
 0x176   :  { %v460_v36 = vadd.f32 %v458_v34, %v456_v35 }
 0x177   :  { %v466_v37 = vld [vmem:[#allocation2] sm:$0xff] }
 0x178   :  { %462 = vst.msk [vmem:[#allocation2 + $0x8] sm:$0xff] %vm100_vm0, %v460_v36  ;;  %v468_v39 = vsel %vm100_vm0, %v466_v37, 0.0 }
 0x17f   :  { %v467_v38 = vld [vmem:[#allocation2 + $0x8] sm:$0xff] }
 0x180   :  { %v469_v40 = vsel %vm100_vm0, %v467_v38, 0.0 }
 0x181   :  { %v470_v41 = vadd.f32 %v469_v40, %v468_v39 }
 0x183   :  { %471 = vadd.xlane.f32.xlu0 %v470_v41 }
 0x1f6   :  { %v472_v42 = vpop.xlane.xlu0 %471 }
 0x1f7   :  { %v473_v43 = vrot.slane %v472_v42, 4 }
 0x1f9   :  { %v474_v44 = vadd.f32 %v473_v43, %v472_v42 }
 0x1fb   :  { %v475_v45 = vrot.slane %v474_v44, 2 }
 0x1fd   :  { %v476_v46 = vadd.f32 %v475_v45, %v474_v44 }
 0x1ff   :  { %v477_v47 = vrot.slane %v476_v46, 1 }
 0x201   :  { %v478_v48 = vadd.f32 %v477_v47, %v476_v46 }
 0x203   :  { %532 = vpush %v478_v48 }
 0x234   :  { %s533_s14 = spop %532 }
 0x235   :  { %s480_s15 = smul.f32 0.00048828125, %s533_s14 }
 0x237   :  { %v481_v49 = vstv %s480_s15 }
 0x238   :  { %483 = vst.msk [vmem:[#allocation11] sm:$0x1] %vm482_vm1, %v481_v49 }
 0x239   :  { %494 = dma.vmem_to_hbm [thread:$0]  %s490_s3, 16, %s492_s13, [#allocation5]  }
 0x23a   :  { %670 = dma.done.wait [#allocation5], 16  }
 0x23b   :  { %671 = vsyncadd [#allocation5], 4294967280 }
 0x23c   :  { %499 = vsyncpa [#allocation4], 1 }
 0x23d   :  { %500 = vsyncpa [#allocation7], 1 }
 0x23e   :  { %501 = vsyncpa [#allocation10], 1 }
 0x23f   :  { %502 = vsyncpa [#allocation5], 1 }

</bundles_post_ra>
